<compile_context>
chip_gen: v6e
topology: v6e:2x2x1
jax: 0.10.0
libtpu: 0.0.40
codegen_flags: <defaults>
</compile_context>

<pallas_src>
import functools

import jax
import jax.numpy as jnp
import numpy as np
from jax import lax
from jax.experimental import pallas as pl
from jax.experimental.pallas import tpu as pltpu

# Registered buffers of the module (cross-correlation taps).
FILTER_X = ((-1.0, 0.0, 1.0),
            (-2.0, 0.0, 2.0),
            (-1.0, 0.0, 1.0))
FILTER_Y = ((-1.0, -2.0, -1.0),
            ( 0.0,  0.0,  0.0),
            ( 1.0,  2.0,  1.0))


def _image_gradient_kernel(x_ref, act_ref, pose_ref, *, height, width):
    # x_ref   : (1, bT, L)      flattened images, L = H*W (row-major per image)
    # act_ref : (1, bT, L)
    # pose_ref: (1, bT, 2*L)    [0:L] = pose_x, [L:2L] = pose_y (NCHW-compatible)
    H, W = height, width
    L = H * W

    x = x_ref[0]                                   # (bT, L) f32, lane-dense

    # Static edge masks (where the 3x3 stencil reaches the zero padding).
    lane = lax.broadcasted_iota(jnp.int32, (1, L), 1)
    if W & (W - 1) == 0:                           # power-of-two fast path
        col = lane & (W - 1)
    else:
        col = lane % W
    e_pad = col == (W - 1)                         # east neighbor is padding
    w_pad = col == 0                               # west neighbor is padding
    s_pad = lane >= (L - W)                        # south neighbor is padding
    n_pad = lane < W                               # north neighbor is padding

    # Circular rolls (non-negative static shifts); wrapped values are masked to 0,
    # which implements the conv2d zero padding in-kernel (no padded copy in HBM).
    x_e = jnp.where(e_pad, 0.0, pltpu.roll(x, shift=L - 1, axis=1))   # img[i, j+1]
    x_w = jnp.where(w_pad, 0.0, pltpu.roll(x, shift=1, axis=1))       # img[i, j-1]

    # Separable Sobel: horizontal pass ...
    h_diff = x_e - x_w                          # [-1, 0, 1] along W
    h_smooth = x_e + x_w + 2.0 * x              # [ 1, 2, 1] along W

    # ... then vertical pass (shift by +-W in the flattened layout).
    hd_s = jnp.where(s_pad, 0.0, pltpu.roll(h_diff, shift=L - W, axis=1))    # h_diff[i+1]
    hd_n = jnp.where(n_pad, 0.0, pltpu.roll(h_diff, shift=W, axis=1))        # h_diff[i-1]
    hs_s = jnp.where(s_pad, 0.0, pltpu.roll(h_smooth, shift=L - W, axis=1))  # h_smooth[i+1]
    hs_n = jnp.where(n_pad, 0.0, pltpu.roll(h_smooth, shift=W, axis=1))      # h_smooth[i-1]

    pose_x = hd_n + 2.0 * h_diff + hd_s         # Fx = [1,2,1]^T (x) [-1,0,1]
    pose_y = hs_s - hs_n                        # Fy = [-1,0,1]^T (x) [ 1,2,1]

    norm2 = pose_x * pose_x + pose_y * pose_y
    act = jnp.sqrt(norm2)

    # pose[mask] /= act[mask]: one exact reciprocal + 2 multiplies, zeros untouched.
    pos = act > 0.0
    inv = pl.reciprocal(jnp.where(pos, act, 1.0), approx=False)
    pose_xn = jnp.where(pos, pose_x * inv, pose_x)
    pose_yn = jnp.where(pos, pose_y * inv, pose_y)

    act_ref[0, :, :] = act
    pose_ref[0, :, :L] = pose_xn                # lane-aligned dense stores
    pose_ref[0, :, L:] = pose_yn


def _choose_batch_tile(B, L, budget_bytes=4 * 1024 * 1024):
    """Pick how many images to process per grid step.

    Per-step resident bytes: (in L + act L + pose 2L) * 4B * 2 (double-buffer)
    = 32*L per image.  Keep blocks well under the *default* scoped-VMEM limit
    of every generation (v5e 16 MiB, v6e/v7x 32 MiB), and keep >= 2 grid steps
    when B >= 2 so both v7x TensorCores get work via the "parallel" axis.
    """
    per_elem = 32 * L
    bt = max(1, min(B, budget_bytes // max(per_elem, 1)))
    if B >= 2:
        bt = max(1, min(bt, B // 2))
    while B % bt:
        bt -= 1
    return bt


def image_gradient(img_batch: jax.Array):
    """img_batch: (B, 1, H, W) float32 (NCHW, single channel).

    Returns (act, pose) with shapes (B, 1, H, W) and (B, 2, H, W)."""
    assert img_batch.shape[1] == 1
    B, _, H, W = img_batch.shape
    L = H * W

    bt = _choose_batch_tile(B, L)
    G = B // bt

    # Contiguous (free) reshape: no padding pass, no extra HBM traffic.
    x = img_batch.astype(jnp.float32).reshape(G, bt, L)

    # TODO(synk): for very large single images (bt=1 block exceeding VMEM),
    # add a row-tile grid axis with a 1-row halo instead of whole-image blocks.
    kern = functools.partial(_image_gradient_kernel, height=H, width=W)
    act_flat, pose_flat = pl.pallas_call(
        kern,
        out_shape=(
            jax.ShapeDtypeStruct((G, bt, L), jnp.float32),
            jax.ShapeDtypeStruct((G, bt, 2 * L), jnp.float32),
        ),
        grid_spec=pltpu.PrefetchScalarGridSpec(
            num_scalar_prefetch=0,
            grid=(G,),
            in_specs=[
                pl.BlockSpec((1, bt, L), lambda g: (g, 0, 0)),
            ],
            out_specs=[
                pl.BlockSpec((1, bt, L), lambda g: (g, 0, 0)),
                pl.BlockSpec((1, bt, 2 * L), lambda g: (g, 0, 0)),
            ],
        ),
        compiler_params=pltpu.CompilerParams(
            dimension_semantics=("parallel",)),
    )(x)

    # Contiguous (free) reshapes back to NCHW.
    act = act_flat.reshape(B, 1, H, W)
    pose = pose_flat.reshape(B, 2, H, W)
    return act, pose


def _reference(img_batch):
    """Pure-JAX reference mirroring the PyTorch module (cross-correlation)."""
    fx = jnp.array(FILTER_X, dtype=jnp.float32).reshape(1, 1, 3, 3)
    fy = jnp.array(FILTER_Y, dtype=jnp.float32).reshape(1, 1, 3, 3)
    dn = lax.conv_dimension_numbers(img_batch.shape, fx.shape,
                                    ("NCHW", "OIHW", "NCHW"))
    pose_x = lax.conv_general_dilated(img_batch, fx, (1, 1),
                                      [(1, 1), (1, 1)], dimension_numbers=dn)
    pose_y = lax.conv_general_dilated(img_batch, fy, (1, 1),
                                      [(1, 1), (1, 1)], dimension_numbers=dn)
    pose = jnp.concatenate([pose_x, pose_y], axis=1)
    act = jnp.sqrt(jnp.sum(pose * pose, axis=1, keepdims=True))
    mask = act > 0.0
    safe = jnp.where(mask, act, 1.0)
    pose = jnp.where(mask, pose / safe, pose)
    return act, pose


if __name__ == "__main__":
    key = jax.random.PRNGKey(0)
    B, C, H, W = 2, 1, 16, 16
    img = jax.random.normal(key, (B, C, H, W), dtype=jnp.float32)

    act, pose = image_gradient(img)
    act, pose = jax.block_until_ready((act, pose))

    act_ref, pose_ref = _reference(img)
    np.testing.assert_allclose(np.asarray(act), np.asarray(act_ref),
                               rtol=1e-5, atol=1e-5)
    np.testing.assert_allclose(np.asarray(pose), np.asarray(pose_ref),
                               rtol=1e-5, atol=1e-5)

    assert act.shape == (B, 1, H, W)
    assert pose.shape == (B, 2, H, W)
    print("KERNEL_OK")
</pallas_src>

<mosaic_0001>
module attributes {stable_mosaic.version = 11 : i64} {
  func.func @_image_gradient_kernel(%arg0: i32, %arg1: memref<1x1x256xf32, #tpu.memory_space<vmem>>, %arg2: memref<1x1x256xf32, #tpu.memory_space<vmem>>, %arg3: memref<1x1x512xf32, #tpu.memory_space<vmem>>) attributes {dimension_semantics = [#tpu.dimension_semantics<parallel>], iteration_bounds = array<i64: 2>, scalar_prefetch = 0 : i64, scratch_operands = 0 : i64, tpu.core_type = #tpu.core_type<tc>, window_params = [{transform_indices = @transform_0, window_bounds = array<i64: 1, 1, 256>}, {transform_indices = @transform_1, window_bounds = array<i64: 1, 1, 256>}, {transform_indices = @transform_2, window_bounds = array<i64: 1, 1, 512>}]} {
    %c0 = arith.constant 0 : index
    %c0_0 = arith.constant 0 : index
    %c0_1 = arith.constant 0 : index
    %0 = vector.load %arg1[%c0, %c0_0, %c0_1] : memref<1x1x256xf32, #tpu.memory_space<vmem>>, vector<1x1x256xf32>
    %1 = vector.shape_cast %0 : vector<1x1x256xf32> to vector<1x256xf32>
    %2 = tpu.iota {dimensions = array<i32: 1>} : vector<1x256xi32>
    %c15_i32 = arith.constant 15 : i32
    %3 = vector.broadcast %c15_i32 : i32 to vector<1x256xi32>
    %4 = arith.andi %2, %3 : vector<1x256xi32>
    %c15_i32_2 = arith.constant 15 : i32
    %5 = vector.broadcast %c15_i32_2 : i32 to vector<1x256xi32>
    %6 = arith.cmpi eq, %4, %5 : vector<1x256xi32>
    %c0_i32 = arith.constant 0 : i32
    %7 = vector.broadcast %c0_i32 : i32 to vector<1x256xi32>
    %8 = arith.cmpi eq, %4, %7 : vector<1x256xi32>
    %c240_i32 = arith.constant 240 : i32
    %9 = vector.broadcast %c240_i32 : i32 to vector<1x256xi32>
    %10 = arith.cmpi sge, %2, %9 : vector<1x256xi32>
    %c16_i32 = arith.constant 16 : i32
    %11 = vector.broadcast %c16_i32 : i32 to vector<1x256xi32>
    %12 = arith.cmpi slt, %2, %11 : vector<1x256xi32>
    %c255_i32 = arith.constant 255 : i32
    %13 = tpu.dynamic_rotate %1 by %c255_i32 dim 1 : vector<1x256xf32>, i32 -> vector<1x256xf32>
    %cst = arith.constant 0.000000e+00 : f32
    %14 = vector.broadcast %cst : f32 to vector<1x256xf32>
    %15 = arith.select %6, %14, %13 : vector<1x256xi1>, vector<1x256xf32>
    %c1_i32 = arith.constant 1 : i32
    %16 = tpu.dynamic_rotate %1 by %c1_i32 dim 1 : vector<1x256xf32>, i32 -> vector<1x256xf32>
    %cst_3 = arith.constant 0.000000e+00 : f32
    %17 = vector.broadcast %cst_3 : f32 to vector<1x256xf32>
    %18 = arith.select %8, %17, %16 : vector<1x256xi1>, vector<1x256xf32>
    %19 = arith.subf %15, %18 : vector<1x256xf32>
    %20 = arith.addf %15, %18 : vector<1x256xf32>
    %cst_4 = arith.constant 2.000000e+00 : f32
    %21 = vector.broadcast %cst_4 : f32 to vector<1x256xf32>
    %22 = arith.mulf %21, %1 : vector<1x256xf32>
    %23 = arith.addf %20, %22 : vector<1x256xf32>
    %c240_i32_5 = arith.constant 240 : i32
    %24 = tpu.dynamic_rotate %19 by %c240_i32_5 dim 1 : vector<1x256xf32>, i32 -> vector<1x256xf32>
    %cst_6 = arith.constant 0.000000e+00 : f32
    %25 = vector.broadcast %cst_6 : f32 to vector<1x256xf32>
    %26 = arith.select %10, %25, %24 : vector<1x256xi1>, vector<1x256xf32>
    %c16_i32_7 = arith.constant 16 : i32
    %27 = tpu.dynamic_rotate %19 by %c16_i32_7 dim 1 : vector<1x256xf32>, i32 -> vector<1x256xf32>
    %cst_8 = arith.constant 0.000000e+00 : f32
    %28 = vector.broadcast %cst_8 : f32 to vector<1x256xf32>
    %29 = arith.select %12, %28, %27 : vector<1x256xi1>, vector<1x256xf32>
    %c240_i32_9 = arith.constant 240 : i32
    %30 = tpu.dynamic_rotate %23 by %c240_i32_9 dim 1 : vector<1x256xf32>, i32 -> vector<1x256xf32>
    %cst_10 = arith.constant 0.000000e+00 : f32
    %31 = vector.broadcast %cst_10 : f32 to vector<1x256xf32>
    %32 = arith.select %10, %31, %30 : vector<1x256xi1>, vector<1x256xf32>
    %c16_i32_11 = arith.constant 16 : i32
    %33 = tpu.dynamic_rotate %23 by %c16_i32_11 dim 1 : vector<1x256xf32>, i32 -> vector<1x256xf32>
    %cst_12 = arith.constant 0.000000e+00 : f32
    %34 = vector.broadcast %cst_12 : f32 to vector<1x256xf32>
    %35 = arith.select %12, %34, %33 : vector<1x256xi1>, vector<1x256xf32>
    %cst_13 = arith.constant 2.000000e+00 : f32
    %36 = vector.broadcast %cst_13 : f32 to vector<1x256xf32>
    %37 = arith.mulf %36, %19 : vector<1x256xf32>
    %38 = arith.addf %29, %37 : vector<1x256xf32>
    %39 = arith.addf %38, %26 : vector<1x256xf32>
    %40 = arith.subf %32, %35 : vector<1x256xf32>
    %41 = arith.mulf %39, %39 : vector<1x256xf32>
    %42 = arith.mulf %40, %40 : vector<1x256xf32>
    %43 = arith.addf %41, %42 : vector<1x256xf32>
    %44 = math.sqrt %43 : vector<1x256xf32>
    %cst_14 = arith.constant 0.000000e+00 : f32
    %45 = vector.broadcast %cst_14 : f32 to vector<1x256xf32>
    %46 = arith.cmpf ogt, %44, %45 : vector<1x256xf32>
    %cst_15 = arith.constant 1.000000e+00 : f32
    %47 = vector.broadcast %cst_15 : f32 to vector<1x256xf32>
    %48 = arith.select %46, %44, %47 : vector<1x256xi1>, vector<1x256xf32>
    %49 = tpu.reciprocal %48 : vector<1x256xf32> -> vector<1x256xf32>
    %50 = arith.mulf %39, %49 : vector<1x256xf32>
    %51 = arith.select %46, %50, %39 : vector<1x256xi1>, vector<1x256xf32>
    %52 = arith.mulf %40, %49 : vector<1x256xf32>
    %53 = arith.select %46, %52, %40 : vector<1x256xi1>, vector<1x256xf32>
    %c0_16 = arith.constant 0 : index
    %c0_17 = arith.constant 0 : index
    %c0_18 = arith.constant 0 : index
    %54 = vector.load %arg2[%c0_16, %c0_17, %c0_18] : memref<1x1x256xf32, #tpu.memory_space<vmem>>, vector<1x1x256xf32>
    %55 = vector.shape_cast %54 : vector<1x1x256xf32> to vector<1x256xf32>
    %56 = vector.shape_cast %44 : vector<1x256xf32> to vector<1x1x256xf32>
    tpu.vector_store %arg2[%c0_16, %c0_17, %c0_18], %56 {strides = array<i32>} : memref<1x1x256xf32, #tpu.memory_space<vmem>>, vector<1x1x256xf32>,
    %c0_19 = arith.constant 0 : index
    %c0_20 = arith.constant 0 : index
    %c0_21 = arith.constant 0 : index
    %57 = vector.load %arg3[%c0_19, %c0_20, %c0_21] : memref<1x1x512xf32, #tpu.memory_space<vmem>>, vector<1x1x256xf32>
    %58 = vector.shape_cast %57 : vector<1x1x256xf32> to vector<1x256xf32>
    %59 = vector.shape_cast %51 : vector<1x256xf32> to vector<1x1x256xf32>
    tpu.vector_store %arg3[%c0_19, %c0_20, %c0_21], %59 {strides = array<i32>} : memref<1x1x512xf32, #tpu.memory_space<vmem>>, vector<1x1x256xf32>,
    %c0_22 = arith.constant 0 : index
    %c0_23 = arith.constant 0 : index
    %c256 = arith.constant 256 : index
    %60 = vector.load %arg3[%c0_22, %c0_23, %c256] : memref<1x1x512xf32, #tpu.memory_space<vmem>>, vector<1x1x256xf32>
    %61 = vector.shape_cast %60 : vector<1x1x256xf32> to vector<1x256xf32>
    %62 = vector.shape_cast %53 : vector<1x256xf32> to vector<1x1x256xf32>
    tpu.vector_store %arg3[%c0_22, %c0_23, %c256], %62 {strides = array<i32>} : memref<1x1x512xf32, #tpu.memory_space<vmem>>, vector<1x1x256xf32>,
    return
  }
  func.func @transform_0(%arg0: i32) -> (i32, i32, i32) {
    %c0_i32 = arith.constant 0 : i32
    %c0_i32_0 = arith.constant 0 : i32
    %c0_i32_1 = arith.constant 0 : i32
    return %arg0, %c0_i32, %c0_i32_0 : i32, i32, i32
  }
  func.func @transform_1(%arg0: i32) -> (i32, i32, i32) {
    %c0_i32 = arith.constant 0 : i32
    %c0_i32_0 = arith.constant 0 : i32
    %c0_i32_1 = arith.constant 0 : i32
    return %arg0, %c0_i32, %c0_i32_0 : i32, i32, i32
  }
  func.func @transform_2(%arg0: i32) -> (i32, i32, i32) {
    %c0_i32 = arith.constant 0 : i32
    %c0_i32_0 = arith.constant 0 : i32
    %c0_i32_1 = arith.constant 0 : i32
    return %arg0, %c0_i32, %c0_i32_0 : i32, i32, i32
  }
}

</mosaic_0001>

<bundles_post_ra>
// kernel: tpu_custom_call.1
= control target key start
LH: loop header
LB: loop body
LE: loop exit
PB: predicated region body
PF: predicated region fallthrough
CT: control target
= control target key end

     0   :  { %8 = vsyncpa [#allocation3], 0  ;;  %s991_s0 = inlined_call_operand.hbm [shape: f32[2,1,256], index: 0, kind: input, shape index: {}]   ;;  %s992_s1 = inlined_call_operand.hbm [shape: f32[2,1,256], index: 1, kind: output, shape index: {0}]   ;;  %s993_s2 = inlined_call_operand.hbm [shape: f32[2,1,512], index: 2, kind: output, shape index: {1}]  }
   0x1   :  { %10 = vsyncpa [#allocation3 + $0x1], 0 }
   0x2   :  { %11 = vsyncpa [#allocation4], 0 }
   0x3   :  { %13 = vsyncpa [#allocation4 + $0x1], 0 }
   0x4   :  { %14 = vsyncpa [#allocation7], 0 }
   0x5   :  { %16 = vsyncpa [#allocation7 + $0x1], 0  ;;  %s736_s9 = smov 0   ;;  %s738_s10 = smov 0  }
   0x6   :  { %s740_s11 = smov 0   ;;  %s742_s12 = smov 0  }
   0x7 LB: > { %s757_s13 = sadd.s32 4294967295, %s711_s12   ;;  %s504_s14 = sadd.s32 4294967294, %s711_s12   ;;  %s711_s12 = sphi %s742_s12, %s1012_s12   ;;  %s707_s11 = sphi %s740_s11, %s1011_s11   ;;  %s703_s10 = sphi %s738_s10, %s1010_s10   ;;  %s699_s9 = sphi %s736_s9, %s1009_s9  }
   0x8   : > { %s761_s15 = sadd.s32 1, %s711_s12   ;;  %s29_s16 = sadd.s32 1, %s707_s11 }
   0x9   : > { %s26_s17 = ssub.s32 %s711_s12, %s761_s15  ;;  %p36_p0 = scmp.ne.s32.totalorder %s707_s11, %s703_s10 }
   0xa   : > { %p27_p1 = scmp.eq.s32.totalorder %s26_s17, 0  ;;  %p37_p2 = scmp.eq.s32.totalorder %s711_s12, 0 }
   0xb   : > { %p42_p3 = scmp.ne.s32.totalorder %s703_s10, %s699_s9  ;;  %p43_p4 = scmp.eq.s32.totalorder %s757_s13, 0 }
   0xc   : > { %s773_s18 = scalar_select %p27_p1, %s707_s11, %s29_s16  }
   0xd   : > { %p775_p5 = por %p37_p2, %p36_p0  ;;  %p779_p6 = por %p43_p4, %p42_p3 }
   0xe   : > { %p66_p7 = scmp.eq.s32.totalorder %s757_s13, 1  ;;  %p72_p8 = scmp.eq.s32.totalorder %s504_s14, 1 }
   0xf   : > { %s997_s20 = scalar_select %p779_p6, 1, 0 }
  0x10   : > { %p542_p10 = scmp.lt.s32.totalorder %s711_s12, 2  ;;  %p786_p11 = por %p66_p7, %p36_p0 }
  0x11   : > { %p790_p12 = por %p72_p8, %p42_p3  ;;  %s118_s23 = sand.u32 1, %s707_s11  }
  0x12   : > { %s998_s21 = scalar_select %p786_p11, 1, 0 }
  0x13   : > { %s999_s22 = scalar_select %p790_p12, 1, 0 }
  0x14   : > { %s522_s24 = sshll.u32 %s711_s12, 5  ;;  %s507_s25 = sshll.u32 %s118_s23, 1 }
  0x15   : > { %s799_s28 = scalar_lea.hbm %s991_s0, %s522_s24  ;;  %s122_s29 = scalar_lea.vmem [#allocation2], %s507_s25 }
  0x16   : > { %s130_s30 = sshll.u32 %s122_s29, 4  ;;  %p803_p13 = pnand %p542_p10, %p775_p5  ;;  %s807_s30 = int_to_ptr.vmem [resolvable:$true] %s130_s30 }
  0x17   : > { %s119_s4 = scalar_lea.sflag [#allocation3], %s118_s23  ;;  %s589_s5 = scalar_lea.hbm %s799_s28, 32 }
  0x18   : > { %p590_p2 = scmp.ne.s32.totalorder %s799_s28, %s589_s5  ;;  %p591_p3 = pneg %p803_p13 }
  0x19   : > { %s594_s8 = scalar_lea.hbm %s991_s0, 64  ;;  %p595_p5 = scmp.lt.s32.totalorder %s799_s28, %s991_s0 }
  0x1a   : > { %p592_p4 = pnand %p591_p3, %p590_p2  ;;  %p596_p8 = scmp.lt.s32.totalorder %s594_s8, %s589_s5 }
  0x1c   : > { %p593_p7 = pneg %p592_p4  ;;  %p597_p10 = por %p596_p8, %p595_p5 }
  0x1e   : > { %p598_p9 = pnand %p597_p10, %p593_p7 }
  0x20   : > { %601 = shalt.err (!%p598_p9)
}
  0x21   : > { %s602_s17 = scalar_lea.vmem %s807_s30, 32  ;;  %s713_s19 = smov [#allocation2]  }
  0x22   : > { %p603_p0 = scmp.ne.s32.totalorder %s807_s30, %s602_s17  ;;  %s607_s23 = sshll.u32 %s713_s19, 4  ;;  %s608_s23 = int_to_ptr.vmem [resolvable:$false] %s607_s23 }
  0x23   : > { %s609_s24 = scalar_lea.vmem %s608_s23, 64  ;;  %p610_p4 = scmp.lt.s32.totalorder %s807_s30, %s608_s23 }
  0x24   : > { %p605_p1 = pnand %p603_p0, %p591_p3  ;;  %p611_p12 = scmp.lt.s32.totalorder %s609_s24, %s602_s17 }
  0x26   : > { %p606_p2 = pneg %p605_p1  ;;  %p612_p11 = por %p611_p12, %p610_p4 }
  0x28   : > { %p613_p6 = pnand %p612_p11, %p606_p2 }
  0x2a   : > { %616 = shalt.err (!%p613_p6)
}
  0x2b   : > { %534 = dma.hbm_to_vmem [thread:$0]  (!%p803_p13), %s799_s28, 32, %s807_s30, %s119_s4  }
  0x2c   : > { %p1001_p9 = scmp.lt.s32.totalorder %s711_s12, 3  ;;  %p1002_p7 = scmp.ge.s32.totalorder %s711_s12, 1 }
  0x2e   : > { %p136_p0 = pnand %p1002_p7, %p1001_p9 }
  0x2f   : > { %s834_s25 = sand.u32 (!%p136_p0), 1, %s703_s10   ;;  %p1003_p6 = scmp.ne.s32.totalorder (!%p136_p0), %s997_s20, 0 }
  0x30   : > { %139 = sbr.rel (%p136_p0) target bundleno = 381 (0x17d), region = 24  ;;  %s511_s26 = sshll.u32 (!%p136_p0), %s834_s25, 1 }
  0x31   : > { %s142_s27 = scalar_lea.sflag (!%p136_p0), [#allocation3], %s834_s25  ;;  %s145_s29 = scalar_lea.vmem (!%p136_p0), [#allocation2], %s511_s26 }
  0x35   : > { %686 = dma.done.wait (%p1003_p6), %s142_s27, 32  }
  0x36   : > { %688 = vsyncadd (%p1003_p6), %s142_s27, 4294967264  ;;  %v172_v0 = vlaneseq  ;;  %v171_v4 = vld [vmem:[%s145_s29] sm:$0x3]  ;;  %s714_s28 = smov 1   ;;  %s715_s30 = smov 127  }
  0x37   : > { %v218_v6 = vmul.f32 2.0, %v171_v4  ;;  %s716_s20 = smov 16   ;;  %s717_s3 = smov 112  }
  0x38   : > { %v845_v1 = vshrl.u32 %v172_v0, 7  ;;  %v850_v10 = vand.u32 127, %v172_v0  ;;  %s523_s4 = sshll.u32 %s757_s13, 5  ;;  %s163_s5 = scalar_lea.vmem [#allocation5], %s511_s26  ;;  %vm906_vm15 = vcmp.lt.s32.totalorder %v172_v0, 256 }
  0x39   : > { %s388_s6 = sshll.u32 %s163_s5, 4  ;;  %s386_s14 = scalar_lea.hbm %s992_s1, %s523_s4  ;;  %s389_s6 = int_to_ptr.vmem [resolvable:$true] %s388_s6 }
  0x3a   : > { %v188_v2 = vsub.s32 0, %v845_v1  ;;  %v192_v3 = vsub.s32 1, %v845_v1  ;;  %v174_v11 = vadd.s32 128, %v850_v10  ;;  %v175_v12 = vand.u32 15, %v850_v10  ;;  %s369_s16 = scalar_lea.sflag [#allocation4], %s834_s25  ;;  %s617_s17 = scalar_lea.vmem %s389_s6, 32 }
  0x3b   : > { %vm209_vm0 = vcmp.lt.s32.totalorder %v850_v10, 1  ;;  %vm200_vm1 = vcmp.lt.s32.totalorder %v850_v10, 127  ;;  %vm183_vm6 = vcmp.lt.s32.totalorder %v850_v10, 16  ;;  %vm236_vm7 = vcmp.lt.s32.totalorder %v850_v10, 112  ;;  %p618_p11 = scmp.ne.s32.totalorder %s389_s6, %s617_s17  ;;  %p1006_p12 = scmp.ne.s32.totalorder %s998_s21, 0 }
  0x3c   : > { %v189_v5 = vrot.slane %v171_v4, %v188_v2  ;;  %v223_v7 = vrot.slane %v218_v6, %v188_v2  ;;  %v193_v8 = vrot.slane %v171_v4, %v192_v3  ;;  %v227_v9 = vrot.slane %v218_v6, %v192_v3  ;;  %s719_s19 = smov [#allocation5]  }
  0x3d   : > { %v176_v13 = vand.u32 15, %v174_v11  ;;  %vm179_vm2 = vcmp.eq.s32.totalorder %v175_v12, 0  ;;  %vm177_vm4 = vcmp.eq.s32.totalorder %v175_v12, 15  ;;  %vm182_vm8 = vcmp.ge.s32.totalorder %v174_v11, 240  ;;  %p619_p13 = pnand %p618_p11, %p1006_p12  ;;  %s621_s23 = sshll.u32 %s719_s19, 4  ;;  %s622_s23 = int_to_ptr.vmem [resolvable:$false] %s621_s23 }
  0x3e   : > { %205 = vrot.lane.b32.xlu1 %v189_v5, %s714_s28  ;;  %196 = vrot.lane.b32.xlu0 %v189_v5, %s715_s30  ;;  %v718_v4 = vmov 1966171168   ;;  %s623_s24 = scalar_lea.vmem %s622_s23, 64  ;;  %p624_p3 = scmp.lt.s32.totalorder %s389_s6, %s622_s23 }
  0x3f   : > { %vm180_vm3 = vcmp.eq.s32.totalorder %v176_v13, 0  ;;  %vm178_vm5 = vcmp.eq.s32.totalorder %v176_v13, 15  ;;  %v311_v5 = vunpack.c.l.s4 %v718_v4  ;;  %p620_p1 = pneg %p619_p13  ;;  %p625_p5 = scmp.lt.s32.totalorder %s623_s24, %s617_s17 }
  0x41   : > { %p626_p8 = por %p625_p5, %p624_p3 }
  0x42   : > { %207 = vrot.lane.b32.xlu1 %v193_v8, %s714_s28  ;;  %198 = vrot.lane.b32.xlu0 %v193_v8, %s715_s30 }
  0x43   : > { %p627_p10 = pnand %p626_p8, %p620_p1 }
  0xb0   : > { %v206_v14 = vpop.permute.xlu1 %205  ;;  %v197_v15 = vpop.permute.xlu0 %196 }
  0xb4   : > { %v208_v16 = vpop.permute.xlu1 %207  ;;  %v199_v17 = vpop.permute.xlu0 %198 }
  0xb5   : > { %v210_v18 = vsel %vm209_vm0, %v206_v14, %v208_v16  ;;  %v211_v19 = vsel %vm209_vm0, %v208_v16, %v206_v14  ;;  %v201_v20 = vsel %vm200_vm1, %v197_v15, %v199_v17  ;;  %v202_v21 = vsel %vm200_vm1, %v199_v17, %v197_v15 }
  0xb6   : > { %v212_v22 = vsel %vm179_vm2, 0.0, %v211_v19  ;;  %v213_v23 = vsel %vm180_vm3, 0.0, %v210_v18  ;;  %v203_v24 = vsel %vm177_vm4, 0.0, %v201_v20  ;;  %v204_v25 = vsel %vm178_vm5, 0.0, %v202_v21 }
  0xb7   : > { %v214_v26 = vsub.f32 %v203_v24, %v212_v22  ;;  %v215_v27 = vsub.f32 %v204_v25, %v213_v23  ;;  %v216_v28 = vadd.f32 %v212_v22, %v203_v24  ;;  %v217_v29 = vadd.f32 %v213_v23, %v204_v25 }
  0xb9   : > { %243 = vrot.lane.b32.xlu1 %v215_v27, %s716_s20  ;;  %241 = vrot.lane.b32.xlu0 %v214_v26, %s716_s20  ;;  %v231_v30 = vadd.f32 %v227_v9, %v217_v29  ;;  %v230_v31 = vadd.f32 %v223_v7, %v216_v28  ;;  %v265_v40 = vmul.f32 2.0, %v214_v26  ;;  %v266_v41 = vmul.f32 2.0, %v215_v27 }
  0xba   : > { %v312_v7 = vunpack.c.0.s8 %v311_v5 }
  0xbc   : > { %v897_v14 = vsub.s32 %v312_v7, %v845_v1 }
  0xbd   : > { %234 = vrot.lane.b32.xlu1 %v215_v27, %s717_s3  ;;  %232 = vrot.lane.b32.xlu0 %v214_v26, %s717_s3 }
  0xc1   : > { %251 = vrot.lane.b32.xlu1 %v231_v30, %s717_s3  ;;  %249 = vrot.lane.b32.xlu0 %v230_v31, %s717_s3 }
  0xc5   : > { %259 = vrot.lane.b32.xlu1 %v231_v30, %s716_s20  ;;  %257 = vrot.lane.b32.xlu0 %v230_v31, %s716_s20 }
 0x12b   : > { %v244_v32 = vpop.permute.xlu1 %243  ;;  %v242_v33 = vpop.permute.xlu0 %241 }
 0x12c   : > { %v246_v34 = vsel %vm183_vm6, %v244_v32, %v242_v33  ;;  %v245_v39 = vsel %vm183_vm6, %v242_v33, %v244_v32 }
 0x12d   : > { %v247_v37 = vsel %vm183_vm6, 0.0, %v246_v34  ;;  %v268_v46 = vadd.f32 %v266_v41, %v245_v39 }
 0x12e   : > { %v267_v44 = vadd.f32 %v265_v40, %v247_v37 }
 0x12f   : > { %v235_v35 = vpop.permute.xlu1 %234  ;;  %v233_v36 = vpop.permute.xlu0 %232 }
 0x130   : > { %v238_v38 = vsel %vm236_vm7, %v235_v35, %v233_v36  ;;  %v237_v47 = vsel %vm236_vm7, %v233_v36, %v235_v35 }
 0x131   : > { %v240_v45 = vsel %vm182_vm8, 0.0, %v238_v38  ;;  %v873_v52 = vadd.f32 %v267_v44, %v237_v47 }
 0x132   : > { %v871_v49 = vadd.f32 %v268_v46, %v240_v45 }
 0x133   : > { %v252_v42 = vpop.permute.xlu1 %251  ;;  %v250_v43 = vpop.permute.xlu0 %249  ;;  %v273_v62 = vmul.f32 %v873_v52, %v873_v52 }
 0x134   : > { %v254_v48 = vsel %vm236_vm7, %v252_v42, %v250_v43  ;;  %v253_v56 = vsel %vm236_vm7, %v250_v43, %v252_v42  ;;  %v274_v60 = vmul.f32 %v871_v49, %v871_v49 }
 0x135   : > { %v256_v53 = vsel %vm182_vm8, 0.0, %v254_v48 }
 0x137   : > { %v260_v50 = vpop.permute.xlu1 %259  ;;  %v258_v51 = vpop.permute.xlu0 %257 }
 0x138   : > { %v261_v54 = vsel %vm183_vm6, %v258_v51, %v260_v50  ;;  %v262_v55 = vsel %vm183_vm6, %v260_v50, %v258_v51 }
 0x139   : > { %v263_v57 = vsel %vm183_vm6, 0.0, %v262_v55  ;;  %v884_v58 = vsub.f32 %v256_v53, %v261_v54 }
 0x13a   : > { %v886_v59 = vsub.f32 %v253_v56, %v263_v57 }
 0x13b   : > { %v276_v61 = vmul.f32 %v884_v58, %v884_v58 }
 0x13c   : > { %v275_v63 = vmul.f32 %v886_v59, %v886_v59 }
 0x13d   : > { %v278_v2 = vadd.f32 %v276_v61, %v274_v60 }
 0x13e   : > { %v277_v3 = vadd.f32 %v275_v63, %v273_v62 }
 0x13f   : > { %581 = vrsqrt.f32 %v278_v2  ;;  %vm288_vm9 = vcmp.eq.f32.partialorder %v278_v2, inf  ;;  %v291_v11 = vand.u32 2147483648, %v278_v2  ;;  %vm290_vm11 = vcmp.eq.f32.partialorder %v278_v2, 0.0 }
 0x140   : > { %583 = vrsqrt.f32 %v277_v3  ;;  %vm281_vm10 = vcmp.eq.f32.partialorder %v277_v3, inf  ;;  %v284_v12 = vand.u32 2147483648, %v277_v3  ;;  %vm283_vm12 = vcmp.eq.f32.partialorder %v277_v3, 0.0 }
 0x14c   : > { %v582_v6 = vpop.eup %581 }
 0x14d   : > { %v584_v8 = vpop.eup %583  ;;  %v287_v9 = vmul.f32 %v582_v6, %v278_v2 }
 0x14e   : > { %v280_v10 = vmul.f32 %v584_v8, %v277_v3 }
 0x14f   : > { %v289_v13 = vsel %vm288_vm9, %v278_v2, %v287_v9 }
 0x150   : > { %v282_v15 = vsel %vm281_vm10, %v277_v3, %v280_v10  ;;  %v292_v16 = vsel %vm290_vm11, %v291_v11, %v289_v13 }
 0x151   : > { %v285_v17 = vsel %vm283_vm12, %v284_v12, %v282_v15  ;;  %vm294_vm13 = vcmp.gt.f32.partialorder %v292_v16, 0.0 }
 0x152   : > { %vm293_vm14 = vcmp.gt.f32.partialorder %v285_v17, 0.0  ;;  %v296_v18 = vsel %vm294_vm13, %v292_v16, 1.0  ;;  %v309_v19 = vcombine.low %v285_v17, %v292_v16 }
 0x153   : > { %v295_v20 = vsel %vm293_vm14, %v285_v17, 1.0  ;;  %585 = vrcp.f32 %v296_v18 }
 0x154   : > { %587 = vrcp.f32 %v295_v20  ;;  %v316_v1 = vrot.slane %v309_v19, %v897_v14 }
 0x156   : > { %v323_v22 = vrot.slane %v316_v1, %v897_v14 }
 0x158   : > { %329 = vst.msk [vmem:[%s163_s5] sm:$0x3] %vm906_vm15, %v323_v22 }
 0x159   : > { %630 = shalt.err (!%p627_p10)
}
 0x15a   : > { %s631_s26 = scalar_lea.hbm %s386_s14, 32  ;;  %s635_s28 = scalar_lea.hbm %s992_s1, 64 }
 0x15b   : > { %p632_p2 = scmp.ne.s32.totalorder %s386_s14, %s631_s26  ;;  %p636_p7 = scmp.lt.s32.totalorder %s386_s14, %s992_s1 }
 0x15c   : > { %p637_p0 = scmp.lt.s32.totalorder %s635_s28, %s631_s26 }
 0x15d   : > { %p633_p4 = pnand %p632_p2, %p1006_p12 }
 0x15e   : > { %p638_p6 = por %p637_p0, %p636_p7 }
 0x15f   : > { %p634_p9 = pneg %p633_p4 }
 0x161   : > { %p639_p11 = pnand %p638_p6, %p634_p9 }
 0x163   : > { %642 = shalt.err (!%p639_p11)
}
 0x164   : > { %527 = dma.vmem_to_hbm [thread:$0]  (%p1006_p12), %s389_s6, 32, %s386_s14, %s369_s16   ;;  %v586_v0 = vpop.eup %585 }
 0x165   : > { %s513_s3 = sshll.u32 %s834_s25, 2  ;;  %v588_v23 = vpop.eup %587  ;;  %v300_v24 = vmul.f32 %v586_v0, %v871_v49  ;;  %v304_v25 = vmul.f32 %v586_v0, %v884_v58  ;;  %s524_s4 = sshll.u32 %s757_s13, 6 }
 0x166   : > { %v299_v26 = vmul.f32 %v588_v23, %v873_v52  ;;  %v303_v27 = vmul.f32 %v588_v23, %v886_v59  ;;  %s170_s5 = scalar_lea.vmem [#allocation6], %s513_s3  ;;  %s950_s14 = scalar_lea.hbm %s993_s2, %s524_s4 }
 0x167   : > { %v302_v28 = vsel %vm294_vm13, %v300_v24, %v871_v49  ;;  %v306_v29 = vsel %vm294_vm13, %v304_v25, %v884_v58  ;;  %s402_s6 = sshll.u32 %s170_s5, 4  ;;  %s374_s13 = scalar_lea.sflag [#allocation7], %s834_s25  ;;  %s403_s6 = int_to_ptr.vmem [resolvable:$true] %s402_s6 }
 0x168   : > { %v301_v30 = vsel %vm293_vm14, %v299_v26, %v873_v52  ;;  %v305_v31 = vsel %vm293_vm14, %v303_v27, %v886_v59  ;;  %s643_s16 = scalar_lea.vmem %s403_s6, 64  ;;  %s720_s17 = smov [#allocation6]  }
 0x169   : > { %v332_v32 = vcombine.low %v301_v30, %v302_v28  ;;  %v351_v33 = vcombine.low %v305_v31, %v306_v29  ;;  %p644_p13 = scmp.ne.s32.totalorder %s403_s6, %s643_s16  ;;  %s647_s19 = sshll.u32 %s720_s17, 4  ;;  %s648_s19 = int_to_ptr.vmem [resolvable:$false] %s647_s19 }
 0x16a   : > { %s649_s23 = scalar_lea.vmem %s648_s19, 128  ;;  %p650_p5 = scmp.lt.s32.totalorder %s403_s6, %s648_s19 }
 0x16b   : > { %v339_v34 = vrot.slane %v332_v32, %v897_v14  ;;  %v358_v35 = vrot.slane %v351_v33, %v897_v14  ;;  %p645_p1 = pnand %p644_p13, %p1006_p12  ;;  %p651_p8 = scmp.lt.s32.totalorder %s649_s23, %s643_s16 }
 0x16d   : > { %v365_v36 = vrot.slane %v358_v35, %v897_v14  ;;  %v346_v37 = vrot.slane %v339_v34, %v897_v14  ;;  %p646_p3 = pneg %p645_p1  ;;  %p652_p10 = por %p651_p8, %p650_p5 }
 0x16f   : > { %348 = vst.msk [vmem:[%s170_s5] sm:$0x3] %vm906_vm15, %v346_v37  ;;  %367 = vst.msk [vmem:[%s170_s5 + $0x2] sm:$0x3] %vm906_vm15, %v365_v36  ;;  %p653_p2 = pnand %p652_p10, %p646_p3 }
 0x171   : > { %656 = shalt.err (!%p653_p2)
}
 0x172   : > { %s657_s24 = scalar_lea.hbm %s950_s14, 64  ;;  %s661_s27 = scalar_lea.hbm %s993_s2, 128 }
 0x173   : > { %p658_p4 = scmp.ne.s32.totalorder %s950_s14, %s657_s24  ;;  %p662_p0 = scmp.lt.s32.totalorder %s950_s14, %s993_s2 }
 0x174   : > { %p663_p6 = scmp.lt.s32.totalorder %s661_s27, %s657_s24 }
 0x175   : > { %p659_p9 = pnand %p658_p4, %p1006_p12 }
 0x176   : > { %p664_p11 = por %p663_p6, %p662_p0 }
 0x177   : > { %p660_p7 = pneg %p659_p9 }
 0x179   : > { %p665_p13 = pnand %p664_p11, %p660_p7 }
 0x17b   : > { %668 = shalt.err (!%p665_p13)
}
 0x17c   : > { %528 = dma.vmem_to_hbm [thread:$0]  (%p1006_p12), %s403_s6, 64, %s950_s14, %s374_s13  }
 0x17d PF: > { %s414_s30 = sand.u32 1, %s699_s9   ;;  %p1007_p1 = scmp.ne.s32.totalorder %s999_s22, 0 }
 0x17e   : > { %p1008_p3 = scmp.ge.s32.totalorder %s711_s12, 2  ;;  %s415_s20 = scalar_lea.sflag [#allocation4], %s414_s30 }
 0x180   : > { %p536_p5 = pnand %p1008_p3, %p1007_p1 }
 0x182   : > { %p537_p8 = pneg %p536_p5 }
 0x184   : > { %690 = dma.done.wait (%p537_p8), %s415_s20, 32  }
 0x185   : > { %692 = vsyncadd (%p537_p8), %s415_s20, 4294967264  ;;  %s424_s3 = scalar_lea.sflag [#allocation7], %s414_s30 }
 0x186   : > { %694 = dma.done.wait (%p537_p8), %s424_s3, 64  }
 0x187   : > { %696 = vsyncadd (%p537_p8), %s424_s3, 4294967232  ;;  %p19_p12 = scmp.ge.s32.totalorder %s761_s15, 4   ;;  %s1009_s9 = smov %s703_s10 }
 0x188   : > { %s1010_s10 = smov %s707_s11  ;;  %s1011_s11 = smov %s773_s18 }
 0x189   : > { %s1012_s12 = smov %s761_s15  ;;  %21 = sbr.rel (!%p19_p12) target bundleno = 7 (0x7), region = 86 }
 0x18e   :  { %429 = vsyncpa [#allocation3], 1 }
 0x18f   :  { %431 = vsyncpa [#allocation3 + $0x1], 1 }
 0x190   :  { %432 = vsyncpa [#allocation4], 1 }
 0x191   :  { %434 = vsyncpa [#allocation4 + $0x1], 1 }
 0x192   :  { %435 = vsyncpa [#allocation7], 1 }
 0x193   :  { %437 = vsyncpa [#allocation7 + $0x1], 1 }

</bundles_post_ra>
